<compile_context>
chip_gen: v7x
topology: tpu7x:2x2x1
jax: 0.10.0
libtpu: 0.0.40
codegen_flags: <defaults>
</compile_context>

<pallas_src>
import functools

import jax
import jax.numpy as jnp
from jax import lax
from jax.experimental import pallas as pl
from jax.experimental.pallas import tpu as pltpu

LANE = 128
SUBLANES = 8
MAX_BLOCK_ROWS = 8192      # 8192 x 128 x 4B = 4 MiB per f32 input block
ROW_ALIGN = 32             # sublane multiple valid for f32 / bf16 / int8 inputs
NUM_SLICES = 2             # "parallel" axis: one slice per TensorCore on v7x


def _round_up(v, m):
    return ((v + m - 1) // m) * m


def _dice_partials_kernel(x_ref, y_ref, acc_xy_ref, acc_sum_ref, *,
                          block_rows, blocks_per_slice, rows_valid, needs_mask):
    c = pl.program_id(0)   # slice index (parallel axis)
    i = pl.program_id(1)   # block within slice (reduction axis)

    @pl.when(i == 0)
    def _init():
        acc_xy_ref[...] = jnp.zeros_like(acc_xy_ref)
        acc_sum_ref[...] = jnp.zeros_like(acc_sum_ref)

    x = x_ref[...].astype(jnp.float32)   # (block_rows, 128)
    y = y_ref[...].astype(jnp.float32)

    if needs_mask:
        # Zero rows that are (a) past the end of the array inside the partial
        # boundary block (Pallas leaves that region undefined), or (b) part of
        # a phantom block whose index_map was clamped onto a real block.
        base = (c * blocks_per_slice + i) * block_rows
        row_ids = base + lax.broadcasted_iota(jnp.int32, (block_rows, 1), 0)
        keep = row_ids < rows_valid
        x = jnp.where(keep, x, 0.0)
        y = jnp.where(keep, y, 0.0)

    # Per-(sublane, lane) partial sums: the axis-0 sum over aligned (8, 128)
    # vreg tiles is pure VALU work; the expensive cross-lane/sublane reduce is
    # deferred to the wrapper and runs exactly once.
    xy = jnp.sum((x * y).reshape(block_rows // SUBLANES, SUBLANES, LANE), axis=0)
    s = jnp.sum((x + y).reshape(block_rows // SUBLANES, SUBLANES, LANE), axis=0)
    acc_xy_ref[...] += xy
    acc_sum_ref[...] += s


def dice_loss(inputs, targets, eps=1.0):
    """DiceLoss.forward(inputs, targets) with eps (default 1). Scalar f32."""
    x = inputs.reshape(-1)   # free for contiguous inputs; keep native dtype
    y = targets.reshape(-1)
    n = x.shape[0]

    # Lane-dense layout (rows, 128). Typical segmentation shapes already have
    # n % 128 == 0, so this pad (a full copy) is a rare fallback only.
    rem = (-n) % LANE
    if rem:
        x = jnp.pad(x, (0, rem))
        y = jnp.pad(y, (0, rem))
    rows = (n + rem) // LANE

    block_rows = min(MAX_BLOCK_ROWS, _round_up(rows, ROW_ALIGN))
    if rows < block_rows:
        # Tiny input (< ~4 MiB): pad rows up to one block; copy is negligible.
        x2d = jnp.pad(x.reshape(rows, LANE), ((0, block_rows - rows), (0, 0)))
        y2d = jnp.pad(y.reshape(rows, LANE), ((0, block_rows - rows), (0, 0)))
        rows = block_rows
    else:
        x2d = x.reshape(rows, LANE)
        y2d = y.reshape(rows, LANE)

    total_blocks = pl.cdiv(rows, block_rows)
    blocks_per_slice = pl.cdiv(total_blocks, NUM_SLICES)
    needs_mask = (rows % block_rows != 0) or (total_blocks % NUM_SLICES != 0)

    def in_index_map(c, i):
        # Clamp phantom blocks of the last slice onto a real block; their
        # contribution is masked to zero inside the kernel.
        return (jnp.minimum(c * blocks_per_slice + i, total_blocks - 1), 0)

    kernel = functools.partial(
        _dice_partials_kernel,
        block_rows=block_rows,
        blocks_per_slice=blocks_per_slice,
        rows_valid=rows,
        needs_mask=needs_mask,
    )

    out_rows = NUM_SLICES * SUBLANES
    cost = pl.CostEstimate(
        flops=4 * rows * LANE,
        transcendentals=0,
        bytes_accessed=rows * LANE * (x2d.dtype.itemsize + y2d.dtype.itemsize)
        + 2 * out_rows * LANE * 4,
    )

    part_xy, part_sum = pl.pallas_call(
        kernel,
        out_shape=(
            jax.ShapeDtypeStruct((out_rows, LANE), jnp.float32),
            jax.ShapeDtypeStruct((out_rows, LANE), jnp.float32),
        ),
        grid_spec=pltpu.PrefetchScalarGridSpec(
            num_scalar_prefetch=0,
            grid=(NUM_SLICES, blocks_per_slice),
            in_specs=[
                pl.BlockSpec((block_rows, LANE), in_index_map),
                pl.BlockSpec((block_rows, LANE), in_index_map),
            ],
            # One resident (8, 128) per-lane partial block per slice (per
            # TensorCore on v7x), revisited across the whole reduction axis.
            out_specs=[
                pl.BlockSpec((SUBLANES, LANE), lambda c, i: (c, 0)),
                pl.BlockSpec((SUBLANES, LANE), lambda c, i: (c, 0)),
            ],
        ),
        compiler_params=pltpu.CompilerParams(
            dimension_semantics=("parallel", "arbitrary"),
            # 2 inputs x 2 buffers x <= 4 MiB blocks + tiny outputs: fits with
            # headroom on v5e/v6e (128 MiB VMEM) and v7x (64 MiB per TC).
            vmem_limit_bytes=32 * 1024 * 1024,
        ),
        cost_estimate=cost,
    )(x2d, y2d)

    # Cross-lane/sublane reduce + dice arithmetic: runs once, trivial in XLA.
    intersection = jnp.sum(part_xy)
    total = jnp.sum(part_sum)
    dice = (2.0 * intersection + eps) / (total + eps)
    return 1.0 - dice


def _dice_ref(inputs, targets, eps=1.0):
    x = inputs.reshape(-1).astype(jnp.float32)
    y = targets.reshape(-1).astype(jnp.float32)
    intersection = jnp.sum(x * y)
    dice = (2.0 * intersection + eps) / (jnp.sum(x) + jnp.sum(y) + eps)
    return 1.0 - dice


if __name__ == "__main__":
    key = jax.random.PRNGKey(0)
    k1, k2 = jax.random.split(key)
    # segmentation-style inputs: probabilities (B, C, H, W), binary targets
    inputs = jax.nn.sigmoid(jax.random.normal(k1, (2, 4, 16, 16), dtype=jnp.float32))
    targets = (jax.random.uniform(k2, (2, 4, 16, 16)) > 0.5).astype(jnp.float32)

    loss = jax.block_until_ready(dice_loss(inputs, targets, eps=1.0))
    ref = jax.block_until_ready(_dice_ref(inputs, targets, eps=1.0))
    assert jnp.allclose(loss, ref, rtol=1e-5, atol=1e-6), (loss, ref)
    print("KERNEL_OK")
</pallas_src>

<mosaic_0001>
module attributes {stable_mosaic.version = 11 : i64} {
  func.func @_dice_partials_kernel(%arg0: i32, %arg1: i32, %arg2: memref<32x128xf32, #tpu.memory_space<vmem>>, %arg3: memref<32x128xf32, #tpu.memory_space<vmem>>, %arg4: memref<8x128xf32, #tpu.memory_space<vmem>>, %arg5: memref<8x128xf32, #tpu.memory_space<vmem>>) attributes {dimension_semantics = [#tpu.dimension_semantics<parallel>, #tpu.dimension_semantics<arbitrary>], iteration_bounds = array<i64: 2, 1>, scalar_prefetch = 0 : i64, scratch_operands = 0 : i64, tpu.core_type = #tpu.core_type<tc>, window_params = [{transform_indices = @transform_0, window_bounds = array<i64: 32, 128>}, {transform_indices = @transform_1, window_bounds = array<i64: 32, 128>}, {transform_indices = @transform_2, window_bounds = array<i64: 8, 128>}, {transform_indices = @transform_3, window_bounds = array<i64: 8, 128>}]} {
    %c0_i32 = arith.constant 0 : i32
    %0 = arith.cmpi eq, %arg1, %c0_i32 : i32
    %1 = arith.extui %0 : i1 to i32
    %c0_i32_0 = arith.constant 0 : i32
    %2 = arith.cmpi ne, %1, %c0_i32_0 : i32
    scf.if %2 {
      %cst_16 = arith.constant 0.000000e+00 : f32
      %33 = vector.broadcast %cst_16 : f32 to vector<8x128xf32>
      %c0_17 = arith.constant 0 : index
      %c0_18 = arith.constant 0 : index
      %34 = vector.load %arg4[%c0_17, %c0_18] : memref<8x128xf32, #tpu.memory_space<vmem>>, vector<8x128xf32>
      tpu.vector_store %arg4[%c0_17, %c0_18], %33 {strides = array<i32>} : memref<8x128xf32, #tpu.memory_space<vmem>>, vector<8x128xf32>,
      %cst_19 = arith.constant 0.000000e+00 : f32
      %35 = vector.broadcast %cst_19 : f32 to vector<8x128xf32>
      %c0_20 = arith.constant 0 : index
      %c0_21 = arith.constant 0 : index
      %36 = vector.load %arg5[%c0_20, %c0_21] : memref<8x128xf32, #tpu.memory_space<vmem>>, vector<8x128xf32>
      tpu.vector_store %arg5[%c0_20, %c0_21], %35 {strides = array<i32>} : memref<8x128xf32, #tpu.memory_space<vmem>>, vector<8x128xf32>,
    } else {
    }
    %c0 = arith.constant 0 : index
    %c0_1 = arith.constant 0 : index
    %3 = vector.load %arg2[%c0, %c0_1] : memref<32x128xf32, #tpu.memory_space<vmem>>, vector<32x128xf32>
    %c0_2 = arith.constant 0 : index
    %c0_3 = arith.constant 0 : index
    %4 = vector.load %arg3[%c0_2, %c0_3] : memref<32x128xf32, #tpu.memory_space<vmem>>, vector<32x128xf32>
    %c1_i32 = arith.constant 1 : i32
    %5 = arith.muli %arg0, %c1_i32 : i32
    %6 = arith.addi %5, %arg1 : i32
    %c32_i32 = arith.constant 32 : i32
    %7 = arith.muli %6, %c32_i32 : i32
    %8 = tpu.iota {dimensions = array<i32: 0>} : vector<32x1xi32>
    %9 = vector.broadcast %7 : i32 to vector<32x1xi32>
    %10 = arith.addi %9, %8 : vector<32x1xi32>
    %c32_i32_4 = arith.constant 32 : i32
    %11 = vector.broadcast %c32_i32_4 : i32 to vector<32x1xi32>
    %12 = arith.cmpi slt, %10, %11 : vector<32x1xi32>
    %cst = arith.constant 0.000000e+00 : f32
    %13 = vector.shape_cast %12 : vector<32x1xi1> to vector<32x1xi1>
    %14 = vector.broadcast %13 : vector<32x1xi1> to vector<32x128xi1>
    %15 = vector.broadcast %cst : f32 to vector<32x128xf32>
    %16 = arith.select %14, %3, %15 : vector<32x128xi1>, vector<32x128xf32>
    %cst_5 = arith.constant 0.000000e+00 : f32
    %17 = vector.shape_cast %12 : vector<32x1xi1> to vector<32x1xi1>
    %18 = vector.broadcast %17 : vector<32x1xi1> to vector<32x128xi1>
    %19 = vector.broadcast %cst_5 : f32 to vector<32x128xf32>
    %20 = arith.select %18, %4, %19 : vector<32x128xi1>, vector<32x128xf32>
    %21 = arith.mulf %16, %20 : vector<32x128xf32>
    %22 = vector.shape_cast %21 : vector<32x128xf32> to vector<4x8x128xf32>
    %cst_6 = arith.constant dense<0.000000e+00> : vector<8x128xf32>
    %23 = vector.multi_reduction <add>, %22, %cst_6 [0] : vector<4x8x128xf32> to vector<8x128xf32>
    %24 = arith.addf %16, %20 : vector<32x128xf32>
    %25 = vector.shape_cast %24 : vector<32x128xf32> to vector<4x8x128xf32>
    %cst_7 = arith.constant dense<0.000000e+00> : vector<8x128xf32>
    %26 = vector.multi_reduction <add>, %25, %cst_7 [0] : vector<4x8x128xf32> to vector<8x128xf32>
    %c0_8 = arith.constant 0 : index
    %c0_9 = arith.constant 0 : index
    %27 = vector.load %arg4[%c0_8, %c0_9] : memref<8x128xf32, #tpu.memory_space<vmem>>, vector<8x128xf32>
    %28 = arith.addf %27, %23 : vector<8x128xf32>
    %c0_10 = arith.constant 0 : index
    %c0_11 = arith.constant 0 : index
    %29 = vector.load %arg4[%c0_10, %c0_11] : memref<8x128xf32, #tpu.memory_space<vmem>>, vector<8x128xf32>
    tpu.vector_store %arg4[%c0_10, %c0_11], %28 {strides = array<i32>} : memref<8x128xf32, #tpu.memory_space<vmem>>, vector<8x128xf32>,
    %c0_12 = arith.constant 0 : index
    %c0_13 = arith.constant 0 : index
    %30 = vector.load %arg5[%c0_12, %c0_13] : memref<8x128xf32, #tpu.memory_space<vmem>>, vector<8x128xf32>
    %31 = arith.addf %30, %26 : vector<8x128xf32>
    %c0_14 = arith.constant 0 : index
    %c0_15 = arith.constant 0 : index
    %32 = vector.load %arg5[%c0_14, %c0_15] : memref<8x128xf32, #tpu.memory_space<vmem>>, vector<8x128xf32>
    tpu.vector_store %arg5[%c0_14, %c0_15], %31 {strides = array<i32>} : memref<8x128xf32, #tpu.memory_space<vmem>>, vector<8x128xf32>,
    return
  }
  func.func @transform_0(%arg0: i32, %arg1: i32) -> (i32, i32) {
    %c1_i32 = arith.constant 1 : i32
    %0 = arith.muli %arg0, %c1_i32 : i32
    %1 = arith.addi %0, %arg1 : i32
    %c0_i32 = arith.constant 0 : i32
    %2 = arith.minsi %1, %c0_i32 : i32
    %c0_i32_0 = arith.constant 0 : i32
    %c0_i32_1 = arith.constant 0 : i32
    return %2, %c0_i32_0 : i32, i32
  }
  func.func @transform_1(%arg0: i32, %arg1: i32) -> (i32, i32) {
    %c1_i32 = arith.constant 1 : i32
    %0 = arith.muli %arg0, %c1_i32 : i32
    %1 = arith.addi %0, %arg1 : i32
    %c0_i32 = arith.constant 0 : i32
    %2 = arith.minsi %1, %c0_i32 : i32
    %c0_i32_0 = arith.constant 0 : i32
    %c0_i32_1 = arith.constant 0 : i32
    return %2, %c0_i32_0 : i32, i32
  }
  func.func @transform_2(%arg0: i32, %arg1: i32) -> (i32, i32) {
    %c0_i32 = arith.constant 0 : i32
    %c0_i32_0 = arith.constant 0 : i32
    return %arg0, %c0_i32 : i32, i32
  }
  func.func @transform_3(%arg0: i32, %arg1: i32) -> (i32, i32) {
    %c0_i32 = arith.constant 0 : i32
    %c0_i32_0 = arith.constant 0 : i32
    return %arg0, %c0_i32 : i32, i32
  }
}

</mosaic_0001>

<bundles_post_ra>
// kernel: tpu_custom_call.1
= control target key start
LH: loop header
LB: loop body
LE: loop exit
PB: predicated region body
PF: predicated region fallthrough
CT: control target
= control target key end

     0   :  { %9 = vsyncpa [#allocation3], 0  ;;  %s1098_s0 = inlined_call_operand.hbm [shape: f32[32,128], index: 0, kind: input, shape index: {}]   ;;  %s1099_s1 = inlined_call_operand.hbm [shape: f32[32,128], index: 1, kind: input, shape index: {}]   ;;  %s1100_s2 = inlined_call_operand.hbm [shape: f32[16,128], index: 2, kind: output, shape index: {0}]   ;;  %s1101_s3 = inlined_call_operand.hbm [shape: f32[16,128], index: 3, kind: output, shape index: {1}]  }
   0x1   :  { %11 = vsyncpa [#allocation3 + $0x1], 0 }
   0x2   :  { %12 = vsyncpa [#allocation6], 0 }
   0x3   :  { %14 = vsyncpa [#allocation6 + $0x1], 0 }
   0x4   :  { %15 = vsyncpa [#allocation4], 0 }
   0x5   :  { %17 = vsyncpa [#allocation4 + $0x1], 0 }
   0x6   :  { %18 = vsyncpa [#allocation9], 0 }
   0x7   :  { %20 = vsyncpa [#allocation9 + $0x1], 0  ;;  %s859_s12 = smov 0   ;;  %s861_s13 = smov 0  }
   0x8   :  { %s863_s14 = smov 0   ;;  %s865_s15 = smov 0  }
   0x9   :  { %s867_s16 = smov 0   ;;  %s869_s17 = smov 0  }
   0xa   :  { %s871_s18 = smov 0   ;;  %s873_s19 = smov 0  }
   0xb LB: > { %s509_s20 = sadd.s32 4294967295, %s831_s19   ;;  %s510_s21 = sadd.s32 4294967294, %s831_s19   ;;  %s831_s19 = sphi %s873_s19, %s26_s19   ;;  %s827_s18 = sphi %s871_s18, %s1120_s18   ;;  %s823_s17 = sphi %s869_s17, %s1119_s17   ;;  %s819_s16 = sphi %s867_s16, %s1088_s16   ;;  %s815_s15 = sphi %s865_s15, %s1118_s15   ;;  %s811_s14 = sphi %s863_s14, %s1117_s14   ;;  %s807_s13 = sphi %s861_s13, %s1116_s13   ;;  %s803_s12 = sphi %s859_s12, %s1115_s12  }
   0xc   : > { %s38_s22 = sadd.s32 1, %s827_s18  ;;  %p800_p1 = scmp.ne.s32.totalorder %s819_s16, 0 }
   0xd   : > { %p40_p0 = scmp.ge.s32.totalorder %s38_s22, 2  ;;  %p59_p2 = scmp.eq.s32.totalorder %s831_s19, 0 }
   0xe   : > { %p64_p3 = scmp.ne.s32.totalorder %s819_s16, %s815_s15  ;;  %p65_p5 = scmp.eq.s32.totalorder %s509_s20, 0 }
   0xf   : > { %s1122_s22 = smov (%p40_p0, %s38_s22), 0  ;;  %p905_p4 = por %p800_p1, %p59_p2 }
  0x10   : > { %p909_p6 = por %p65_p5, %p64_p3  ;;  %s106_s25 = ssub.s32 %s827_s18, %s1122_s22 }
  0x11   : > { %p107_p7 = scmp.eq.s32.totalorder %s106_s25, 0  ;;  %s109_s26 = sadd.s32 1, %s811_s14 }
  0x12   : > { %s1105_s24 = scalar_select %p909_p6, 1, 0 }
  0x13   : > { %s917_s27 = scalar_select %p107_p7, %s811_s14, %s109_s26  }
  0x14   : > { %p119_p8 = scmp.ne.s32.totalorder %s811_s14, %s807_s13  ;;  %p120_p9 = scmp.eq.s32.totalorder %s509_s20, 1 }
  0x15   : > { %p125_p10 = scmp.ne.s32.totalorder %s807_s13, %s803_s12  ;;  %p126_p11 = scmp.eq.s32.totalorder %s510_s21, 1 }
  0x16   : > { %p923_p12 = por %p120_p9, %p119_p8  ;;  %p555_p1 = scmp.lt.s32.totalorder %s831_s19, 2 }
  0x17   : > { %p928_p0 = por %p126_p11, %p125_p10  ;;  %s833_s30 = smov [#allocation2]  }
  0x18   : > { %s1106_s28 = scalar_select %p923_p12, 1, 0 }
  0x19   : > { %s1107_s29 = scalar_select %p928_p0, 1, 0 }
  0x1a   : > { %s186_s4 = sshll.u32 %s833_s30, 4  ;;  %p935_p2 = pnand %p555_p1, %p905_p4  ;;  %s187_s4 = int_to_ptr.vmem [resolvable:$true] %s186_s4 }
  0x1b   : > { %s632_s8 = scalar_lea.hbm %s1098_s0, 512 }
  0x1c   : > { %p633_p3 = scmp.ne.s32.totalorder %s1098_s0, %s632_s8  ;;  %p634_p5 = pneg %p935_p2 }
  0x1d   : > { %p639_p8 = scmp.lt.u32.totalorder %s632_s8, %s632_s8  ;;  %p641_p9 = scmp.lt.u32.totalorder %s632_s8, %s1098_s0 }
  0x1e   : > { %p635_p7 = pnand %p634_p5, %p633_p3 }
  0x1f   : > { %p642_p10 = por %p641_p9, %p639_p8 }
  0x20   : > { %p636_p4 = pneg %p635_p7 }
  0x22   : > { %p643_p11 = pnand %p642_p10, %p636_p4 }
  0x24   : > { %646 = shalt.err (!%p643_p11)
}
  0x25   : > { %s647_s20 = scalar_lea.vmem %s187_s4, 512  ;;  %s654_s21 = scalar_lea.vmem %s187_s4, 1024 }
  0x26   : > { %p648_p1 = scmp.ne.s32.totalorder %s187_s4, %s647_s20  ;;  %p655_p12 = scmp.lt.s32.totalorder %s187_s4, %s187_s4 }
  0x27   : > { %p656_p6 = scmp.lt.s32.totalorder %s654_s21, %s647_s20 }
  0x28   : > { %p650_p13 = pnand %p648_p1, %p634_p5 }
  0x29   : > { %p657_p3 = por %p656_p6, %p655_p12 }
  0x2a   : > { %p651_p0 = pneg %p650_p13 }
  0x2c   : > { %p658_p7 = pnand %p657_p3, %p651_p0 }
  0x2e   : > { %661 = shalt.err (!%p658_p7)
}
  0x2f   : > { %s834_s23 = smov 128   ;;  %s835_s25 = smov 8  }
  0x30   : > { %544 = dma.hbm_to_vmem [thread:$0]  (!%p935_p2), %s1098_s0, 512, %s187_s4, [#allocation3], %s834_s23, %s834_s23, %s835_s25  }
  0x31   : > { %p519_p13 = scmp.ge.s32.totalorder %s831_s19, 1  ;;  %p218_p4 = scmp.lt.s32.totalorder %s831_s19, 3 }
  0x32   : > { %s836_s7 = smov [#allocation5]   ;;  %s662_s11 = scalar_lea.hbm %s1099_s1, 512 }
  0x33   : > { %p966_p8 = pnand %p519_p13, %p218_p4  ;;  %s210_s8 = sshll.u32 %s836_s7, 4  ;;  %s211_s8 = int_to_ptr.vmem [resolvable:$true] %s210_s8 }
  0x34   : > { %p663_p6 = scmp.ne.s32.totalorder %s1099_s1, %s662_s11  ;;  %p669_p9 = scmp.lt.u32.totalorder %s662_s11, %s662_s11 }
  0x35   : > { %s1109_s6 = scalar_select %p966_p8, 1, 0 }
  0x36   : > { %p665_p12 = pnand %p663_p6, %p634_p5  ;;  %p671_p10 = scmp.lt.u32.totalorder %s662_s11, %s1099_s1 }
  0x38   : > { %p666_p0 = pneg %p665_p12  ;;  %p672_p11 = por %p671_p10, %p669_p9 }
  0x3a   : > { %p673_p1 = pnand %p672_p11, %p666_p0 }
  0x3c   : > { %676 = shalt.err (!%p673_p1)
}
  0x3d   : > { %s677_s26 = scalar_lea.vmem %s211_s8, 512  ;;  %s684_s30 = scalar_lea.vmem %s211_s8, 1024 }
  0x3e   : > { %p678_p3 = scmp.ne.s32.totalorder %s211_s8, %s677_s26  ;;  %p685_p4 = scmp.lt.s32.totalorder %s211_s8, %s211_s8 }
  0x3f   : > { %p686_p8 = scmp.lt.s32.totalorder %s684_s30, %s677_s26 }
  0x40   : > { %p680_p7 = pnand %p678_p3, %p634_p5 }
  0x41   : > { %p687_p6 = por %p686_p8, %p685_p4 }
  0x42   : > { %p681_p13 = pneg %p680_p7 }
  0x44   : > { %p688_p12 = pnand %p687_p6, %p681_p13 }
  0x46   : > { %691 = shalt.err (!%p688_p12)
}
  0x47   : > { %547 = dma.hbm_to_vmem [thread:$0]  (!%p935_p2), %s1099_s1, 512, %s211_s8, [#allocation6], %s834_s23, %s834_s23, %s835_s25  }
  0x48   : > { %p1110_p0 = scmp.ne.s32.totalorder %s1109_s6, 0 }
  0x49   : > { %s224_s10 = sand.u32 (!%p1110_p0), 1, %s819_s16   ;;  %p1111_p5 = scmp.ne.s32.totalorder (!%p1110_p0), %s1105_s24, 0 }
  0x4a   : > { %222 = sbr.rel (%p1110_p0) target bundleno = 140 (0x8c), region = 28  ;;  %s520_s11 = sshll.u32 (!%p1110_p0), %s224_s10, 5 }
  0x4b   : > { %s225_s15 = scalar_lea.sflag (!%p1110_p0), [#allocation3], %s224_s10  ;;  %s228_s20 = scalar_lea.vmem (!%p1110_p0), [#allocation2], %s520_s11 }
  0x51   : > { %785 = dma.done.wait (%p1111_p5), %s225_s15, 512  }
  0x52   : > { %787 = vsyncadd (%p1111_p5), %s225_s15, 4294966784  ;;  %s234_s5 = scalar_lea.sflag [#allocation6], %s224_s10  ;;  %s237_s4 = scalar_lea.vmem [#allocation5], %s520_s11 }
  0x53   : > { %789 = dma.done.wait (%p1111_p5), %s234_s5, 512  }
  0x54   : > { %791 = vsyncadd (%p1111_p5), %s234_s5, 4294966784  ;;  %s524_s23 = sshll.u32 %s823_s17, 5  ;;  %v294_v0 = vlaneseq  ;;  %s1006_s25 = sand.u32 1, %s807_s13   ;;  %v284_v10 = vld [vmem:[%s228_s20] sm:$0xff]  ;;  %v285_v11 = vld [vmem:[%s228_s20 + $0x8] sm:$0xff] }
  0x55   : > { %v299_v1 = vstv %s524_s23  ;;  %v286_v12 = vld [vmem:[%s228_s20 + $0x10] sm:$0xff]  ;;  %v287_v13 = vld [vmem:[%s228_s20 + $0x18] sm:$0xff]  ;;  %v288_v14 = vld [vmem:[%s237_s4] sm:$0xff]  ;;  %s522_s24 = sshll.u32 %s1006_s25, 3  ;;  %s527_s6 = sshll.u32 %s823_s17, 7 }
  0x56   : > { %v295_v2 = vshrl.u32 %v294_v0, 7  ;;  %v289_v15 = vld [vmem:[%s237_s4 + $0x8] sm:$0xff]  ;;  %v290_v16 = vld [vmem:[%s237_s4 + $0x10] sm:$0xff]  ;;  %v291_v17 = vld [vmem:[%s237_s4 + $0x18] sm:$0xff]  ;;  %s262_s8 = scalar_lea.vmem [#allocation7], %s522_s24  ;;  %s269_s26 = scalar_lea.vmem [#allocation8], %s522_s24 }
  0x57   : > { %s363_s21 = sshll.u32 %s262_s8, 4  ;;  %s376_s30 = sshll.u32 %s269_s26, 4  ;;  %s1017_s21 = int_to_ptr.vmem [resolvable:$true] %s363_s21  ;;  %s1024_s30 = int_to_ptr.vmem [resolvable:$true] %s376_s30 }
  0x58   : > { %v296_v3 = vadd.s32 8, %v295_v2  ;;  %v297_v4 = vadd.s32 16, %v295_v2  ;;  %v298_v5 = vadd.s32 24, %v295_v2  ;;  %v300_v6 = vadd.s32 %v299_v1, %v295_v2  ;;  %s1015_s10 = scalar_lea.hbm %s1100_s2, %s527_s6  ;;  %s1022_s17 = scalar_lea.hbm %s1101_s3, %s527_s6 }
  0x59   : > { %s345_s20 = scalar_lea.sflag [#allocation4], %s1006_s25  ;;  %s692_s5 = scalar_lea.vmem %s1017_s21, 128 }
  0x5a   : > { %v301_v7 = vadd.s32 %v299_v1, %v296_v3  ;;  %v302_v8 = vadd.s32 %v299_v1, %v297_v4  ;;  %v303_v9 = vadd.s32 %v299_v1, %v298_v5  ;;  %vm304_vm0 = vcmp.lt.s32.totalorder %v300_v6, 32  ;;  %p693_p2 = scmp.ne.s32.totalorder %s1017_s21, %s692_s5  ;;  %p1112_p8 = scmp.ne.s32.totalorder %s1106_s28, 0 }
  0x5b   : > { %v316_v18 = vsel %vm304_vm0, %v284_v10, 0.0  ;;  %v320_v22 = vsel %vm304_vm0, %v288_v14, 0.0  ;;  %s837_s4 = smov [#allocation7]  }
  0x5c   : > { %vm305_vm1 = vcmp.lt.s32.totalorder %v301_v7, 32  ;;  %vm306_vm2 = vcmp.lt.s32.totalorder %v302_v8, 32  ;;  %vm307_vm3 = vcmp.lt.s32.totalorder %v303_v9, 32  ;;  %v324_v26 = vmul.f32 %v320_v22, %v316_v18  ;;  %p694_p9 = pnand %p693_p2, %p1112_p8  ;;  %s696_s23 = sshll.u32 %s837_s4, 4  ;;  %s697_s23 = int_to_ptr.vmem [resolvable:$false] %s696_s23 }
  0x5d   : > { %v317_v19 = vsel %vm305_vm1, %v285_v11, 0.0  ;;  %v318_v20 = vsel %vm306_vm2, %v286_v12, 0.0  ;;  %v319_v21 = vsel %vm307_vm3, %v287_v13, 0.0  ;;  %v321_v23 = vsel %vm305_vm1, %v289_v15, 0.0  ;;  %s698_s24 = scalar_lea.vmem %s697_s23, 256  ;;  %p699_p11 = scmp.lt.s32.totalorder %s1017_s21, %s697_s23 }
  0x5e   : > { %v322_v24 = vsel %vm306_vm2, %v290_v16, 0.0  ;;  %v323_v25 = vsel %vm307_vm3, %v291_v17, 0.0  ;;  %v325_v27 = vmul.f32 %v321_v23, %v317_v19  ;;  %v331_v29 = vadd.f32 %v320_v22, %v316_v18  ;;  %p695_p10 = pneg %p694_p9  ;;  %p700_p1 = scmp.lt.s32.totalorder %s698_s24, %s692_s5 }
  0x5f   : > { %v326_v28 = vmul.f32 %v322_v24, %v318_v20  ;;  %v332_v30 = vadd.f32 %v321_v23, %v317_v19  ;;  %v333_v31 = vadd.f32 %v322_v24, %v318_v20  ;;  %v327_v32 = vmul.f32 %v323_v25, %v319_v21 }
  0x60   : > { %v328_v33 = vadd.f32 %v325_v27, %v324_v26  ;;  %v334_v34 = vadd.f32 %v323_v25, %v319_v21  ;;  %p701_p3 = por %p700_p1, %p699_p11 }
  0x61   : > { %v335_v35 = vadd.f32 %v332_v30, %v331_v29 }
  0x62   : > { %v329_v36 = vadd.f32 %v328_v33, %v326_v28  ;;  %p702_p7 = pnand %p701_p3, %p695_p10 }
  0x63   : > { %v336_v37 = vadd.f32 %v335_v35, %v333_v31 }
  0x64   : > { %v330_v38 = vadd.f32 %v329_v36, %v327_v32 }
  0x65   : > { %v337_v39 = vadd.f32 %v336_v37, %v334_v34 }
  0x66   : > { %340 = vst [vmem:[%s262_s8] sm:$0xff] %v330_v38 }
  0x67   : > { %343 = vst [vmem:[%s269_s26] sm:$0xff] %v337_v39 }
  0x68   : > { %705 = shalt.err (!%p702_p7)
}
  0x69   : > { %s706_s6 = scalar_lea.hbm %s1015_s10, 128  ;;  %s710_s7 = scalar_lea.hbm %s1100_s2, 256 }
  0x6a   : > { %p707_p13 = scmp.ne.s32.totalorder %s1015_s10, %s706_s6  ;;  %p711_p12 = scmp.lt.u32.totalorder %s1015_s10, %s1100_s2 }
  0x6b   : > { %p712_p0 = scmp.lt.u32.totalorder %s710_s7, %s706_s6  ;;  %p714_p2 = scmp.lt.u32.totalorder %s706_s6, %s1015_s10 }
  0x6c   : > { %p708_p4 = pnand %p707_p13, %p1112_p8 }
  0x6d   : > { %p713_p5 = por %p712_p0, %p711_p12 }
  0x6e   : > { %p709_p6 = pneg %p708_p4 }
  0x6f   : > { %p715_p9 = por %p714_p2, %p713_p5 }
  0x71   : > { %p716_p10 = pnand %p715_p9, %p709_p6 }
  0x73   : > { %719 = shalt.err (!%p716_p10)
}
  0x74   : > { %537 = dma.vmem_to_hbm [thread:$0]  (%p1112_p8), %s1017_s21, 128, %s1015_s10, %s345_s20  }
  0x75   : > { %s350_s15 = scalar_lea.sflag [#allocation9], %s1006_s25  ;;  %s720_s5 = scalar_lea.vmem %s1024_s30, 128 }
  0x76   : > { %p721_p11 = scmp.ne.s32.totalorder %s1024_s30, %s720_s5  ;;  %s838_s4 = smov [#allocation8]  }
  0x77   : > { %s724_s23 = sshll.u32 %s838_s4, 4  ;;  %s725_s23 = int_to_ptr.vmem [resolvable:$false] %s724_s23 }
  0x78   : > { %p722_p1 = pnand %p721_p11, %p1112_p8  ;;  %s726_s24 = scalar_lea.vmem %s725_s23, 256 }
  0x79   : > { %p727_p7 = scmp.lt.s32.totalorder %s1024_s30, %s725_s23  ;;  %p728_p13 = scmp.lt.s32.totalorder %s726_s24, %s720_s5 }
  0x7a   : > { %p723_p3 = pneg %p722_p1 }
  0x7b   : > { %p729_p4 = por %p728_p13, %p727_p7 }
  0x7d   : > { %p730_p6 = pnand %p729_p4, %p723_p3 }
  0x7f   : > { %733 = shalt.err (!%p730_p6)
}
  0x80   : > { %s734_s25 = scalar_lea.hbm %s1022_s17, 128  ;;  %s738_s20 = scalar_lea.hbm %s1101_s3, 256 }
  0x81   : > { %p735_p12 = scmp.ne.s32.totalorder %s1022_s17, %s734_s25  ;;  %p739_p2 = scmp.lt.u32.totalorder %s1022_s17, %s1101_s3 }
  0x82   : > { %p740_p9 = scmp.lt.u32.totalorder %s738_s20, %s734_s25  ;;  %p742_p11 = scmp.lt.u32.totalorder %s734_s25, %s1022_s17 }
  0x83   : > { %p736_p0 = pnand %p735_p12, %p1112_p8 }
  0x84   : > { %p741_p10 = por %p740_p9, %p739_p2 }
  0x85   : > { %p737_p5 = pneg %p736_p0 }
  0x86   : > { %p743_p1 = por %p742_p11, %p741_p10 }
  0x88   : > { %p744_p3 = pnand %p743_p1, %p737_p5 }
  0x8a   : > { %747 = shalt.err (!%p744_p3)
}
  0x8b   : > { %538 = dma.vmem_to_hbm [thread:$0]  (%p1112_p8), %s1024_s30, 128, %s1022_s17, %s350_s15  }
  0x8c PF: > { %s388_s26 = sand.u32 1, %s803_s12   ;;  %p1113_p7 = scmp.ne.s32.totalorder %s1107_s29, 0 }
  0x8d   : > { %p1114_p13 = scmp.ge.s32.totalorder %s831_s19, 2  ;;  %s389_s7 = scalar_lea.sflag [#allocation4], %s388_s26 }
  0x8f   : > { %p549_p4 = pnand %p1114_p13, %p1113_p7 }
  0x91   : > { %793 = dma.done.wait (!%p549_p4), %s389_s7, 128  }
  0x92   : > { %795 = vsyncadd (!%p549_p4), %s389_s7, 4294967168  ;;  %s398_s9 = scalar_lea.sflag [#allocation9], %s388_s26 }
  0x93   : > { %797 = dma.done.wait (!%p549_p4), %s398_s9, 128  }
  0x94   : > { %799 = vsyncadd (!%p549_p4), %s398_s9, 4294967168  ;;  %s26_s19 = sadd.s32 1, %s831_s19   ;;  %s1115_s12 = smov %s807_s13 }
  0x95   : > { %p23_p6 = scmp.ge.s32.totalorder %s26_s19, 4   ;;  %s1116_s13 = smov %s811_s14 }
  0x96   : > { %s1117_s14 = smov %s917_s27  ;;  %s1118_s15 = smov %s819_s16 }
  0x97   : > { %s1088_s16 = smov 0   ;;  %s1119_s17 = smov %s827_s18 }
  0x98   : > { %s1120_s18 = smov %s1122_s22  ;;  %25 = sbr.rel (!%p23_p6) target bundleno = 11 (0xb), region = 107 }
  0x9f   :  { %403 = vsyncpa [#allocation3], 1 }
  0xa0   :  { %405 = vsyncpa [#allocation3 + $0x1], 1 }
  0xa1   :  { %406 = vsyncpa [#allocation6], 1 }
  0xa2   :  { %408 = vsyncpa [#allocation6 + $0x1], 1 }
  0xa3   :  { %409 = vsyncpa [#allocation4], 1 }
  0xa4   :  { %411 = vsyncpa [#allocation4 + $0x1], 1 }
  0xa5   :  { %412 = vsyncpa [#allocation9], 1 }
  0xa6   :  { %414 = vsyncpa [#allocation9 + $0x1], 1 }

</bundles_post_ra>
